<compile_context>
chip_gen: v7x
topology: tpu7x:2x2x1
jax: 0.10.0
libtpu: 0.0.40
codegen_flags: <defaults>
</compile_context>

<pallas_src>
import jax
import jax.numpy as jnp
from jax.experimental import pallas as pl
from jax.experimental.pallas import tpu as pltpu


def ensemble_kernel(patches_ref, w1t_ref, b1_ref, w2_ref, b2_ref, out_ref):
    """Fused ensemble forward for one spatial tile (all members at once).

    patches_ref: (9C, TILE_M)  bf16  -- shared im2col slab (spatial in lanes)
    w1t_ref:     (EH, 9C)      bf16  -- all members' conv3x3 weights, concatenated
    b1_ref:      (EH, 1)       f32   -- concatenated hidden biases
    w2_ref:      (1, EH)       f32   -- members' 1x1 weights, pre-divided by E
    b2_ref:      (1,)          f32   -- mean of members' output biases (SMEM scalar)
    out_ref:     (1, TILE_M)   f32   -- ensemble-mean segmentation logits
    """
    # conv3x3 for every ensemble member in one MXU matmul (K = 9*C, N = TILE_M).
    h = jnp.dot(w1t_ref[...], patches_ref[...],
                preferred_element_type=jnp.float32)              # (EH, TILE_M)
    h = jnp.maximum(h + b1_ref[...], 0.0)                        # bias + ReLU (VPU)
    # conv1x1 + ensemble mean as a second MXU dot (1/E already folded into weights).
    y = jnp.dot(w2_ref[...], h,
                preferred_element_type=jnp.float32)              # (1, TILE_M)
    out_ref[...] = (y + b2_ref[0]).astype(out_ref.dtype)


def ensemble_forward(x_nchw, params, tile_m=256):
    """EnsembleModel.forward: mean over member segmentation outputs (NCHW in/out)."""
    w1, b1, w2, b2 = params              # (E,9,C,hid), (E,hid), (E,hid), (E,)
    E, _, C, hid = w1.shape
    N, Cx, H, W = x_nchw.shape
    assert Cx == C
    M = N * H * W
    EH = E * hid
    K = 9 * C

    # ---- wrapper-side im2col: one (9C, M) slab shared by all ensemble members.
    x_nhwc = jnp.transpose(x_nchw, (0, 2, 3, 1)).astype(jnp.float32)
    xpad = jnp.pad(x_nhwc, ((0, 0), (1, 1), (1, 1), (0, 0)))
    cols = [xpad[:, dy:dy + H, dx:dx + W, :].reshape(M, C)
            for dy in range(3) for dx in range(3)]
    patches = jnp.concatenate(cols, axis=-1)                     # (M, 9C)

    # Pad M up to a multiple of tile_m (and of 128) so lane tiling always holds.
    tile_m = max(128, (tile_m // 128) * 128)
    Mp = ((M + tile_m - 1) // tile_m) * tile_m
    if Mp != M:
        patches = jnp.pad(patches, ((0, Mp - M), (0, 0)))
    patches_t = patches.T.astype(jnp.bfloat16)                   # (9C, Mp), lane-dense

    # ---- fuse the ensemble into the weights.
    # (E,9,C,hid) -> (9,C,E,hid) -> (9C, E*hid) -> (EH, 9C); row e*hid+k = member e unit k.
    w1t = jnp.transpose(w1, (1, 2, 0, 3)).reshape(K, EH).T.astype(jnp.bfloat16)
    b1col = b1.reshape(EH, 1).astype(jnp.float32)
    w2row = (w2 / E).reshape(1, EH).astype(jnp.float32)          # ensemble mean folded in
    b2mean = (jnp.sum(b2) / E).reshape(1).astype(jnp.float32)

    grid = (Mp // tile_m,)
    out = pl.pallas_call(
        ensemble_kernel,
        out_shape=jax.ShapeDtypeStruct((1, Mp), jnp.float32),
        grid_spec=pltpu.PrefetchScalarGridSpec(
            num_scalar_prefetch=0,
            grid=grid,
            in_specs=[
                pl.BlockSpec((K, tile_m), lambda i: (0, i)),     # patches tile
                pl.BlockSpec((EH, K), lambda i: (0, 0)),         # fused conv weights
                pl.BlockSpec((EH, 1), lambda i: (0, 0)),         # hidden biases
                pl.BlockSpec((1, EH), lambda i: (0, 0)),         # fused 1x1 weights / E
                pl.BlockSpec(memory_space=pltpu.MemorySpace.SMEM),  # mean output bias
            ],
            out_specs=pl.BlockSpec((1, tile_m), lambda i: (0, i)),
        ),
        compiler_params=pltpu.CompilerParams(
            dimension_semantics=("parallel",),        # shards M tiles across TCs (v7x)
            vmem_limit_bytes=32 * 1024 * 1024,        # explicit budget; fits v7x 64 MiB
        ),
    )(patches_t, w1t, b1col, w2row, b2mean)

    # drop padding, back to NCHW with a single segmentation channel.
    return out[0, :M].reshape(N, H, W)[:, None, :, :]


def reference_forward(x_nchw, params):
    """Pure-JAX reference reproducing the same ensemble-mean semantics (f32)."""
    w1, b1, w2, b2 = params
    E, _, C, hid = w1.shape
    x = jnp.transpose(x_nchw, (0, 2, 3, 1)).astype(jnp.float32)
    outs = []
    for e in range(E):
        k = w1[e].reshape(3, 3, C, hid)  # HWIO
        h = jax.lax.conv_general_dilated(
            x, k, window_strides=(1, 1), padding="SAME",
            dimension_numbers=("NHWC", "HWIO", "NHWC"))
        h = jnp.maximum(h + b1[e], 0.0)
        y = jnp.einsum("nhwk,k->nhw", h, w2[e]) + b2[e]
        outs.append(y)
    mean = jnp.mean(jnp.stack(outs), axis=0)
    return mean[:, None, :, :]


def init_params(key, n_models, in_ch, hidden):
    ks = jax.random.split(key, 4)
    w1 = jax.random.normal(ks[0], (n_models, 9, in_ch, hidden), jnp.float32) * 0.1
    b1 = jax.random.normal(ks[1], (n_models, hidden), jnp.float32) * 0.05
    w2 = jax.random.normal(ks[2], (n_models, hidden), jnp.float32) * 0.1
    b2 = jax.random.normal(ks[3], (n_models,), jnp.float32) * 0.05
    return (w1, b1, w2, b2)


if __name__ == "__main__":
    N, C, H, W = 2, 4, 16, 16
    N_MODELS, HIDDEN = 3, 8

    key = jax.random.PRNGKey(0)
    kx, kp = jax.random.split(key)
    x = jax.random.normal(kx, (N, C, H, W), jnp.float32)
    params = init_params(kp, N_MODELS, C, HIDDEN)

    out = ensemble_forward(x, params)
    out = jax.block_until_ready(out)

    ref = reference_forward(x, params)
    assert out.shape == (N, 1, H, W)
    # bf16 matmul inputs (f32 accumulation) -> relaxed tolerance.
    assert jnp.allclose(out, ref, rtol=1e-2, atol=1e-2), (
        float(jnp.max(jnp.abs(out - ref))))

    print("KERNEL_OK")
</pallas_src>

<mosaic_0001>
module attributes {stable_mosaic.version = 11 : i64} {
  func.func @ensemble_kernel(%arg0: i32, %arg1: memref<36x256xbf16, #tpu.memory_space<vmem>>, %arg2: memref<24x36xbf16, #tpu.memory_space<vmem>>, %arg3: memref<24x1xf32, #tpu.memory_space<vmem>>, %arg4: memref<1x24xf32, #tpu.memory_space<vmem>>, %arg5: memref<1xf32, #tpu.memory_space<smem>>, %arg6: memref<1x256xf32, #tpu.memory_space<vmem>>) attributes {dimension_semantics = [#tpu.dimension_semantics<parallel>], iteration_bounds = array<i64: 2>, scalar_prefetch = 0 : i64, scratch_operands = 0 : i64, tpu.core_type = #tpu.core_type<tc>, window_params = [{transform_indices = @transform_0, window_bounds = array<i64: 36, 256>}, {pipeline_mode = #tpu.pipeline_mode<synchronous>, transform_indices = @transform_1, window_bounds = array<i64: 24, 36>}, {pipeline_mode = #tpu.pipeline_mode<synchronous>, transform_indices = @transform_2, window_bounds = array<i64: 24, 1>}, {pipeline_mode = #tpu.pipeline_mode<synchronous>, transform_indices = @transform_3, window_bounds = array<i64: 1, 24>}, {transform_indices = @transform_4, window_bounds = array<i64: 1>}, {transform_indices = @transform_5, window_bounds = array<i64: 1, 256>}]} {
    %c0 = arith.constant 0 : index
    %c0_0 = arith.constant 0 : index
    %0 = vector.load %arg2[%c0, %c0_0] : memref<24x36xbf16, #tpu.memory_space<vmem>>, vector<24x36xbf16>
    %c0_1 = arith.constant 0 : index
    %c0_2 = arith.constant 0 : index
    %1 = vector.load %arg1[%c0_1, %c0_2] : memref<36x256xbf16, #tpu.memory_space<vmem>>, vector<36x256xbf16>
    %cst = arith.constant dense<0.000000e+00> : vector<24x256xf32>
    %2 = tpu.matmul %0, %1, %cst {dimension_numbers = #tpu.dot_dimension_numbers<[1], [0], [0], [1], [0, 0, 1, 1], [], []>} : vector<24x36xbf16>, vector<36x256xbf16>, vector<24x256xf32> -> vector<24x256xf32>
    %c0_3 = arith.constant 0 : index
    %c0_4 = arith.constant 0 : index
    %3 = vector.load %arg3[%c0_3, %c0_4] : memref<24x1xf32, #tpu.memory_space<vmem>>, vector<24x1xf32>
    %4 = vector.broadcast %3 : vector<24x1xf32> to vector<24x256xf32>
    %5 = arith.addf %2, %4 : vector<24x256xf32>
    %cst_5 = arith.constant 0.000000e+00 : f32
    %6 = vector.broadcast %cst_5 : f32 to vector<24x256xf32>
    %7 = arith.maximumf %5, %6 : vector<24x256xf32>
    %c0_6 = arith.constant 0 : index
    %c0_7 = arith.constant 0 : index
    %8 = vector.load %arg4[%c0_6, %c0_7] : memref<1x24xf32, #tpu.memory_space<vmem>>, vector<1x24xf32>
    %cst_8 = arith.constant dense<0.000000e+00> : vector<1x256xf32>
    %9 = tpu.matmul %8, %7, %cst_8 {dimension_numbers = #tpu.dot_dimension_numbers<[1], [0], [0], [1], [0, 0, 1, 1], [], []>} : vector<1x24xf32>, vector<24x256xf32>, vector<1x256xf32> -> vector<1x256xf32>
    %c0_9 = arith.constant 0 : index
    %10 = memref.load %arg5[%c0_9] : memref<1xf32, #tpu.memory_space<smem>>
    %11 = vector.broadcast %10 : f32 to vector<1x256xf32>
    %12 = arith.addf %9, %11 : vector<1x256xf32>
    %c0_10 = arith.constant 0 : index
    %c0_11 = arith.constant 0 : index
    %13 = vector.load %arg6[%c0_10, %c0_11] : memref<1x256xf32, #tpu.memory_space<vmem>>, vector<1x256xf32>
    tpu.vector_store %arg6[%c0_10, %c0_11], %12 {strides = array<i32>} : memref<1x256xf32, #tpu.memory_space<vmem>>, vector<1x256xf32>,
    return
  }
  func.func @transform_0(%arg0: i32) -> (i32, i32) {
    %c0_i32 = arith.constant 0 : i32
    %c0_i32_0 = arith.constant 0 : i32
    return %c0_i32, %arg0 : i32, i32
  }
  func.func @transform_1(%arg0: i32) -> (i32, i32) {
    %c0_i32 = arith.constant 0 : i32
    %c0_i32_0 = arith.constant 0 : i32
    %c0_i32_1 = arith.constant 0 : i32
    return %c0_i32, %c0_i32_0 : i32, i32
  }
  func.func @transform_2(%arg0: i32) -> (i32, i32) {
    %c0_i32 = arith.constant 0 : i32
    %c0_i32_0 = arith.constant 0 : i32
    %c0_i32_1 = arith.constant 0 : i32
    return %c0_i32, %c0_i32_0 : i32, i32
  }
  func.func @transform_3(%arg0: i32) -> (i32, i32) {
    %c0_i32 = arith.constant 0 : i32
    %c0_i32_0 = arith.constant 0 : i32
    %c0_i32_1 = arith.constant 0 : i32
    return %c0_i32, %c0_i32_0 : i32, i32
  }
  func.func @transform_4(%arg0: i32) -> i32 {
    %c0_i32 = arith.constant 0 : i32
    %c0_i32_0 = arith.constant 0 : i32
    return %c0_i32 : i32
  }
  func.func @transform_5(%arg0: i32) -> (i32, i32) {
    %c0_i32 = arith.constant 0 : i32
    %c0_i32_0 = arith.constant 0 : i32
    return %c0_i32, %arg0 : i32, i32
  }
}

</mosaic_0001>

<bundles_post_ra>
// kernel: tpu_custom_call.1
= control target key start
LH: loop header
LB: loop body
LE: loop exit
PB: predicated region body
PF: predicated region fallthrough
CT: control target
= control target key end

     0   :  { %s979_s0 = inlined_call_operand.hbm [shape: bf16[36,512], index: 0, kind: input, shape index: {}]   ;;  %s980_s1 = inlined_call_operand.vmem [shape: bf16[24,36], index: 1, kind: input, shape index: {}]   ;;  %s981_s2 = inlined_call_operand.vmem [shape: f32[24,1], index: 2, kind: input, shape index: {}]   ;;  %s982_s3 = inlined_call_operand.vmem [shape: f32[1,24], index: 3, kind: input, shape index: {}]   ;;  %s983_s4 = inlined_call_operand.<no memory space> [shape: f32[1], index: 4, kind: input, shape index: {}]   ;;  %s984_s5 = inlined_call_operand.hbm [shape: f32[1,512], index: 5, kind: output, shape index: {}]  }
   0x1   :  { %10 = sst [smem:[#allocation2]] %s983_s4 }
   0x2   :  { %11 = vsyncpa [#allocation4], 0 }
   0x3   :  { %13 = vsyncpa [#allocation4 + $0x1], 0 }
   0x4   :  { %14 = vsyncpa [#allocation5], 0 }
   0x5   :  { %16 = vsyncpa [#allocation5 + $0x1], 0  ;;  %s804_s20 = smov 0   ;;  %s806_s21 = smov 0  }
   0x6   :  { %s808_s22 = smov 0   ;;  %s810_s23 = smov 0  }
   0x7 LB: > { %s825_s4 = sadd.s32 4294967295, %s761_s23   ;;  %s563_s24 = sadd.s32 4294967294, %s761_s23   ;;  %s761_s23 = sphi %s810_s23, %s997_s23   ;;  %s757_s22 = sphi %s808_s22, %s996_s22   ;;  %s753_s21 = sphi %s806_s21, %s995_s21   ;;  %s749_s20 = sphi %s804_s20, %s994_s20  }
   0x8   : > { %s829_s25 = sadd.s32 1, %s761_s23   ;;  %s29_s26 = sadd.s32 1, %s757_s22 }
   0x9   : > { %s26_s27 = ssub.s32 %s761_s23, %s829_s25  ;;  %p36_p0 = scmp.ne.s32.totalorder %s757_s22, %s753_s21 }
   0xa   : > { %p27_p1 = scmp.eq.s32.totalorder %s26_s27, 0  ;;  %p37_p2 = scmp.eq.s32.totalorder %s761_s23, 0 }
   0xb   : > { %p42_p3 = scmp.ne.s32.totalorder %s753_s21, %s749_s20  ;;  %p43_p4 = scmp.eq.s32.totalorder %s825_s4, 0 }
   0xc   : > { %s841_s28 = scalar_select %p27_p1, %s757_s22, %s29_s26  }
   0xd   : > { %p38_p5 = por %p37_p2, %p36_p0  ;;  %p843_p6 = por %p43_p4, %p42_p3 }
   0xe   : > { %p150_p7 = scmp.eq.s32.totalorder %s825_s4, 1  ;;  %p156_p8 = scmp.eq.s32.totalorder %s563_s24, 1 }
   0xf   : > { %p613_p10 = scmp.lt.s32.totalorder %s761_s23, 2  ;;  %s188_s7 = sand.u32 1, %s757_s22  }
  0x10   : > { %p850_p11 = por %p150_p7, %p36_p0  ;;  %p854_p12 = por %p156_p8, %p42_p3 }
  0x11   : > { %s587_s8 = sshll.u32 %s761_s23, 7  ;;  %s599_s9 = smul.u32 40, %s188_s7 }
  0x12   : > { %s987_s30 = scalar_select %p850_p11, 1, 0 }
  0x13   : > { %s988_s6 = scalar_select %p854_p12, 1, 0 }
  0x14   : > { %s863_s12 = scalar_lea.hbm %s979_s0, %s587_s8  ;;  %p865_p13 = pnand %p613_p10, %p38_p5 }
  0x15   : > { %s192_s14 = scalar_lea.vmem [#allocation3], %s599_s9  ;;  %s872_s16 = scalar_lea.sflag [#allocation4], %s188_s7 }
  0x16   : > { %s199_s15 = sshll.u32 %s192_s14, 4  ;;  %s665_s17 = scalar_lea.hbm %s863_s12, 640  ;;  %s869_s15 = int_to_ptr.vmem [resolvable:$true] %s199_s15 }
  0x17   : > { %p666_p1 = scmp.ne.s32.totalorder %s863_s12, %s665_s17  ;;  %p667_p2 = pneg %p865_p13 }
  0x18   : > { %s670_s24 = scalar_lea.hbm %s979_s0, 1280  ;;  %p671_p5 = scmp.lt.u32.totalorder %s863_s12, %s979_s0 }
  0x19   : > { %p668_p3 = pnand %p667_p2, %p666_p1  ;;  %p672_p7 = scmp.lt.u32.totalorder %s670_s24, %s665_s17 }
  0x1a   : > { %p674_p10 = scmp.lt.u32.totalorder %s665_s17, %s863_s12 }
  0x1b   : > { %p669_p4 = pneg %p668_p3  ;;  %p673_p8 = por %p672_p7, %p671_p5 }
  0x1d   : > { %p675_p9 = por %p674_p10, %p673_p8 }
  0x1f   : > { %p676_p0 = pnand %p675_p9, %p669_p4 }
  0x21   : > { %679 = shalt.err (!%p676_p0)
}
  0x22   : > { %s680_s7 = scalar_lea.vmem %s869_s15, 640  ;;  %s763_s8 = smov [#allocation3]  }
  0x23   : > { %p681_p1 = scmp.ne.s32.totalorder %s869_s15, %s680_s7  ;;  %s685_s9 = sshll.u32 %s763_s8, 4  ;;  %s686_s9 = int_to_ptr.vmem [resolvable:$false] %s685_s9 }
  0x24   : > { %s687_s10 = scalar_lea.vmem %s686_s9, 1280  ;;  %p688_p11 = scmp.lt.s32.totalorder %s869_s15, %s686_s9 }
  0x25   : > { %p683_p3 = pnand %p681_p1, %p667_p2  ;;  %p689_p5 = scmp.lt.s32.totalorder %s687_s10, %s680_s7 }
  0x27   : > { %p684_p12 = pneg %p683_p3  ;;  %p690_p7 = por %p689_p5, %p688_p11 }
  0x29   : > { %p691_p8 = pnand %p690_p7, %p684_p12 }
  0x2b   : > { %694 = shalt.err (!%p691_p8)
}
  0x2c   : > { %s764_s11 = smov 256   ;;  %s765_s14 = smov 128  }
  0x2d   : > { %s766_s17 = smov 8   ;;  %p207_p9 = scmp.lt.s32.totalorder %s761_s23, 3 }
  0x2e   : > { %608 = dma.hbm_to_vmem [thread:$0]  (!%p865_p13), %s863_s12, 640, %s869_s15, %s872_s16, %s764_s11, %s765_s14, %s766_s17  }
  0x2f   : > { %p990_p0 = scmp.ge.s32.totalorder %s761_s23, 1 }
  0x31   : > { %p208_p2 = pnand %p990_p0, %p207_p9 }
  0x32   : > { %s904_s18 = sand.u32 (!%p208_p2), 1, %s753_s21  }
  0x33   : > { %211 = sbr.rel (%p208_p2) target bundleno = 536 (0x218), region = 40  ;;  %s214_s24 = scalar_lea.sflag (!%p208_p2), [#allocation4], %s904_s18 }
  0x34   : > { %s600_s19 = smul.u32 (!%p208_p2), 40, %s904_s18 }
  0x36   : > { %s217_s26 = scalar_lea.vmem (!%p208_p2), [#allocation3], %s600_s19 }
  0x3a   : > { %740 = dma.done.wait (%p843_p6), %s214_s24, 640  }
  0x3b   : > { %742 = vsyncadd (%p843_p6), %s214_s24, 4294966656  ;;  %v767_v0 = vmov 0   ;;  %v655_v1 = vld [vmem:[%s217_s26 + $0x4] ss:$8 sps:$4 sm:$0xff]   ;;  %v657_v2 = vld [vmem:[%s217_s26] ss:$8 sps:$4 sm:$0xff]   ;;  %v461_v43 = vlaneseq }
  0x3c   : > { %352 = vmatprep.mubr.bf16.mxu0 %v767_v0  ;;  %362 = vmatprep.mubr.bf16.mxu1 %v767_v0  ;;  %v658_v3 = vld [vmem:[%s217_s26 + $0x14] ss:$8 sps:$4 sm:$0xff]   ;;  %v254_v4 = vld [vmem:[%s217_s26 + $0x20] sm:$0x33]  ;;  %v660_v5 = vld [vmem:[%s217_s26 + $0x10] ss:$8 sps:$4 sm:$0xff]  }
  0x3d   : > { %653 = vset.pattern.permute.xlu0 %v767_v0  ;;  %654 = vset.pattern.permute.xlu1 %v767_v0  ;;  %v577_v6 = vcombine.high %v254_v4, %v254_v4  ;;  %v576_v7 = vcombine.low %v254_v4, %v254_v4  ;;  %v255_v8 = vld [vmem:[%s981_s2] sm:$0xff]  ;;  %vm313_vm0 = vcmask 1041408   ;;  %v257_v9 = vld [vmem:[%s981_s2 + $0x10] sm:$0xff]  ;;  %v256_v10 = vld [vmem:[%s981_s2 + $0x8] sm:$0xff]  ;;  %vm306_vm1 = vcmask 293888   ;;  %s378_s17 = sld [smem:[#allocation2]] }
  0x3e   : > { %320 = vmatprep.subr.bf16.mxu0 %v655_v1  ;;  %593 = vmatprep.subr.bf16.mxu1 %v655_v1  ;;  %v663_v12 = vld [vmem:[%s980_s1] sm:$0xff]   ;;  %v664_v13 = vld [vmem:[%s980_s1 + $0x8] ss:$0 sps:$4 sm:$0xff]   ;;  %v768_v14 = vmov 0.0   ;;  %vm380_vm2 = vcmask 195584   ;;  %v462_v46 = vshrl.u32 %v461_v43, 7 }
  0x3f   : > { %321 = vmatpush1.bf16.msra.mxu0 %v657_v2  ;;  %596 = vmatpush1.bf16.msra.mxu1 %v657_v2  ;;  %v315_v11 = vsel %vm313_vm0, %v576_v7, 0  ;;  %v377_v40 = vld [vmem:[%s982_s3] sm:$0x1]  ;;  %v769_v41 = vmov 1966171168   ;;  %s569_s19 = sshll.u32 %s904_s18, 1 }
  0x40   : > { %322 = vmatprep.subr.bf16.mxu0 %v658_v3  ;;  %594 = vmatprep.subr.bf16.mxu1 %v658_v3  ;;  %v459_v42 = vunpack.c.l.s4 %v769_v41  ;;  %s588_s24 = sshll.u32 %s825_s4, 5  ;;  %s243_s26 = scalar_lea.vmem [#allocation6], %s569_s19  ;;  %vm475_vm3 = vcmp.lt.s32.totalorder %v461_v43, 256 }
  0x41   : > { %260 = vperm.xlu0 %653, %v255_v8   ;;  %270 = vperm.xlu1 %654, %v257_v9   ;;  %s493_s29 = sshll.u32 %s243_s26, 4  ;;  %s935_s15 = scalar_lea.hbm %s984_s5, %s588_s24  ;;  %s937_s29 = int_to_ptr.vmem [resolvable:$true] %s493_s29 }
  0x42   : > { %v460_v45 = vunpack.c.0.s8 %v459_v42  ;;  %s479_s16 = scalar_lea.sflag [#allocation5], %s904_s18  ;;  %s695_s27 = scalar_lea.vmem %s937_s29, 32 }
  0x43   : > { %323 = vmatpush1.bf16.msra.mxu0 %v660_v5  ;;  %597 = vmatpush1.bf16.msra.mxu1 %v660_v5  ;;  %v379_v44 = vstv %s378_s17  ;;  %p696_p6 = scmp.ne.s32.totalorder %s937_s29, %s695_s27  ;;  %p991_p11 = scmp.ne.s32.totalorder %s987_s30, 0 }
  0x44   : > { %578 = vmatprep.subr.msk.bf16.mxu0 %vm313_vm0, %v577_v6  ;;  %595 = vmatprep.subr.msk.bf16.mxu1 %vm313_vm0, %v577_v6  ;;  %v463_v51 = vsub.s32 %v460_v45, %v462_v46  ;;  %s770_s4 = smov [#allocation6]  }
  0x45   : > { %265 = vperm.xlu0 %653, %v256_v10   ;;  %p697_p12 = pnand %p696_p6, %p991_p11  ;;  %s699_s7 = sshll.u32 %s770_s4, 4  ;;  %s700_s7 = int_to_ptr.vmem [resolvable:$false] %s699_s7 }
  0x46   : > { %s701_s8 = scalar_lea.vmem %s700_s7, 64  ;;  %p702_p4 = scmp.lt.s32.totalorder %s937_s29, %s700_s7 }
  0x47   : > { %325 = vmatpush1.bf16.msra.mxu0 %v315_v11  ;;  %598 = vmatpush1.bf16.msra.mxu1 %v315_v11  ;;  %p698_p13 = pneg %p697_p12  ;;  %p703_p10 = scmp.lt.s32.totalorder %s701_s8, %s695_s27 }
  0x49   : > { %p704_p1 = por %p703_p10, %p702_p4 }
  0x4a   : > { %579 = vmatmul.mubr.msk.bf16.vlgmr.msra.gmra.mrb[0].mxu0 %vm306_vm1, %v663_v12  ;;  %580 = vmatmul.mubr.msk.bf16.vlgmr.msra.gmra.mrb[0].mxu1 %vm306_vm1, %v664_v13 }
  0x4b   : > { %448 = vmatprep.mubr.f32.mxu1 %v768_v14  ;;  %p705_p3 = pnand %p704_p1, %p698_p13 }
  0xc0   : > { %v261_v15 = vpop.permute.xlu0 %260  ;;  %v271_v17 = vpop.permute.xlu1 %270 }
  0xc4   : > { %v266_v16 = vpop.permute.xlu0 %265 }
 0x11d   : > { %v354_v18 = vpop.f32.mrb[0].mxu0  ;;  %v364_v19 = vpop.f32.mrb[0].mxu1 }
 0x11e   : > { %v355_v20 = vadd.f32 %v354_v18, %v261_v15  ;;  %v356_v21 = vpop.f32.mrb[1].mxu0  ;;  %v366_v22 = vpop.f32.mrb[1].mxu1  ;;  %v365_v38 = vadd.f32 %v364_v19, %v271_v17 }
 0x11f   : > { %v357_v23 = vadd.f32 %v356_v21, %v261_v15  ;;  %v358_v24 = vpop.f32.mrb[2].mxu0  ;;  %v368_v25 = vpop.f32.mrb[2].mxu1  ;;  %v367_v30 = vadd.f32 %v366_v22, %v271_v17 }
 0x120   : > { %v359_v26 = vadd.f32 %v358_v24, %v266_v16  ;;  %v360_v27 = vpop.f32.mrb[3].mxu0  ;;  %v369_v28 = vpop.f32.mrb[3].mxu1  ;;  %v371_v31 = vmax.f32 %v355_v20, 0.0  ;;  %v375_v39 = vmax.f32 %v365_v38, 0.0 }
 0x121   : > { %v361_v29 = vadd.f32 %v360_v27, %v266_v16  ;;  %v372_v33 = vmax.f32 %v357_v23, 0.0  ;;  %v376_v37 = vmax.f32 %v367_v30, 0.0 }
 0x122   : > { %v373_v32 = vmax.f32 %v359_v26, 0.0 }
 0x123   : > { %v374_v34 = vmax.f32 %v361_v29, 0.0 }
 0x124   : > { %v591_v35 = vpack.c.bf16 %v373_v32, %v371_v31 }
 0x125   : > { %v589_v36 = vpack.c.bf16 %v374_v34, %v372_v33 }
 0x127   : > { %590 = vmatprep.subr.bf16.mxu1 %v589_v36 }
 0x128   : > { %592 = vmatpush1.bf16.msra.mxu1 %v591_v35 }
 0x129   : > { %388 = vmatprep.subr.mxu1 %v376_v37 }
 0x12c   : > { %389 = vmatpush1.msra.mxu1 %v375_v39 }
 0x12d   : > { %581 = vmatmul.mubr.msk.f32.vlgmr.msra.gmra.mrb[4].mxu1 %vm380_vm2, %v377_v40 }
 0x200   : > { %v450_v47 = vpop.f32.mrb[4].mxu1 }
 0x201   : > { %v451_v48 = vadd.f32 %v450_v47, %v379_v44  ;;  %v452_v49 = vpop.f32.mrb[5].mxu1 }
 0x202   : > { %v453_v50 = vadd.f32 %v452_v49, %v379_v44 }
 0x204   : > { %v457_v52 = vcombine.low %v451_v48, %v453_v50 }
 0x206   : > { %v464_v53 = vrot.slane %v457_v52, %v463_v51 }
 0x208   : > { %v471_v54 = vrot.slane %v464_v53, %v463_v51 }
 0x20a   : > { %477 = vst.msk [vmem:[%s243_s26] sm:$0x3] %vm475_vm3, %v471_v54 }
 0x20b   : > { %708 = shalt.err (!%p705_p3)
}
 0x20c   : > { %s709_s18 = scalar_lea.hbm %s935_s15, 32  ;;  %s713_s11 = scalar_lea.hbm %s984_s5, 64 }
 0x20d   : > { %p710_p5 = scmp.ne.s32.totalorder %s935_s15, %s709_s18  ;;  %p714_p9 = scmp.lt.u32.totalorder %s935_s15, %s984_s5 }
 0x20e   : > { %p715_p0 = scmp.lt.u32.totalorder %s713_s11, %s709_s18  ;;  %p717_p6 = scmp.lt.u32.totalorder %s709_s18, %s935_s15 }
 0x20f   : > { %p711_p7 = pnand %p710_p5, %p991_p11 }
 0x210   : > { %p716_p2 = por %p715_p0, %p714_p9 }
 0x211   : > { %p712_p8 = pneg %p711_p7 }
 0x212   : > { %p718_p12 = por %p717_p6, %p716_p2 }
 0x214   : > { %p719_p13 = pnand %p718_p12, %p712_p8 }
 0x216   : > { %722 = shalt.err (!%p719_p13)
}
 0x217   : > { %603 = dma.vmem_to_hbm [thread:$0]  (%p991_p11), %s937_s29, 32, %s935_s15, %s479_s16  }
 0x218 PF: > { %s505_s19 = sand.u32 1, %s749_s20   ;;  %p992_p4 = scmp.ne.s32.totalorder %s988_s6, 0 }
 0x219   : > { %p993_p10 = scmp.ge.s32.totalorder %s761_s23, 2  ;;  %s506_s24 = scalar_lea.sflag [#allocation5], %s505_s19 }
 0x21b   : > { %p610_p1 = pnand %p993_p10, %p992_p4 }
 0x21d   : > { %744 = dma.done.wait (!%p610_p1), %s506_s24, 32  }
 0x21e   : > { %746 = vsyncadd (!%p610_p1), %s506_s24, 4294967264  ;;  %p19_p3 = scmp.ge.s32.totalorder %s829_s25, 4   ;;  %s994_s20 = smov %s753_s21 }
 0x21f   : > { %s995_s21 = smov %s757_s22  ;;  %s996_s22 = smov %s841_s28 }
 0x220   : > { %s997_s23 = smov %s829_s25  ;;  %21 = sbr.rel (!%p19_p3) target bundleno = 7 (0x7), region = 85 }
 0x227   :  { %511 = vsyncpa [#allocation4], 1 }
 0x228   :  { %513 = vsyncpa [#allocation4 + $0x1], 1 }
 0x229   :  { %514 = vsyncpa [#allocation5], 1 }
 0x22a   :  { %516 = vsyncpa [#allocation5 + $0x1], 1 }

</bundles_post_ra>
